<compile_context>
chip_gen: v7x
topology: tpu7x:2x2x1
jax: 0.10.0
libtpu: 0.0.40
codegen_flags: <defaults>
</compile_context>

<pallas_src>
import functools
import math

import jax
import jax.numpy as jnp
from jax.experimental import pallas as pl
from jax.experimental.pallas import tpu as pltpu

KSIZE = 5
PAD = (KSIZE - 1) // 2      # FilterLow: pad = (kernel_size - 1) / 2 = 2
HALO = 8                    # sublane-aligned halo block height (>= PAD)


def _gauss1d(k: int = KSIZE):
    """1-D Gaussian whose outer product equals GaussianFilter's 2-D kernel."""
    mean = (k - 1) / 2.0
    var = (k / 6.0) ** 2.0
    g = [math.exp(-((i - mean) ** 2) / (2.0 * var)) for i in range(k)]
    s = sum(g)
    return tuple(v / s for v in g)


W1 = _gauss1d()             # compile-time immediates; symmetric, sums to 1


def _shift_rows(xv, off, th):
    """Rows [HALO+off, HALO+off+th) of xv: XLU roll + aligned static slice."""
    r = xv.shape[1]
    rolled = pltpu.roll(xv, shift=(-off) % r, axis=1)
    return rolled[:, HALO:HALO + th, :]


def _shift_cols(vt, off):
    """vt[:, :, j+off] with zero fill outside [0, W) (== conv zero padding)."""
    w = vt.shape[2]
    rolled = pltpu.roll(vt, shift=(-off) % w, axis=2)
    col = jax.lax.broadcasted_iota(jnp.int32, (1, 1, w), 2)
    keep = (col < (w - off)) if off > 0 else (col >= (-off))
    return rolled * keep.astype(vt.dtype)


def _filter_kernel(*refs, subtract, normalize, has_halo):
    if has_halo:
        top_ref, mid_ref, bot_ref, out_ref = refs
    else:
        mid_ref, out_ref = refs
    C, TH, W = mid_ref.shape

    x = mid_ref[...].astype(jnp.float32)                       # (C, TH, W)

    if has_halo:
        t = pl.program_id(1)
        top = top_ref[...].astype(jnp.float32) * (t > 0).astype(jnp.float32)
        bot = bot_ref[...].astype(jnp.float32) * (
            t < pl.num_programs(1) - 1).astype(jnp.float32)
    else:
        # Single-tile image: the boundary padding is all zeros.
        top = jnp.zeros((C, HALO, W), jnp.float32)
        bot = jnp.zeros((C, HALO, W), jnp.float32)

    # One sublane-aligned join of 8-row halo blocks with the tile.  Every
    # shifted access below is a roll (XLU) followed by an aligned slice; the
    # circular wrap never reaches the [HALO, HALO+TH) window (|off| <= 2 < 8).
    xv = jnp.concatenate([top, x, bot], axis=1)                # (C, TH+16, W)

    # Vertical 5-tap pass (symmetric kernel: pair taps before multiplying).
    v1 = _shift_rows(xv, -1, TH) + _shift_rows(xv, 1, TH)
    v2 = _shift_rows(xv, -2, TH) + _shift_rows(xv, 2, TH)
    vt = W1[2] * x + W1[1] * v1 + W1[0] * v2

    # Horizontal 5-tap pass; edge columns zero-filled (conv zero padding).
    h1 = _shift_cols(vt, -1) + _shift_cols(vt, 1)
    h2 = _shift_cols(vt, -2) + _shift_cols(vt, 2)

    if subtract:
        s = 0.5 if normalize else 1.0
        base = (0.5 + 0.5 * x) if normalize else x
        res = base - (s * W1[2]) * vt - (s * W1[1]) * h1 - (s * W1[0]) * h2
    else:
        res = W1[2] * vt + W1[1] * h1 + W1[0] * h2
    out_ref[...] = res.astype(out_ref.dtype)


def _round_up(x, m):
    return ((x + m - 1) // m) * m


def _vmem_info():
    cap = 64 * 1024 * 1024                    # conservative default (v7x-sized)
    try:
        cap = int(pltpu.get_tpu_info().vmem_capacity_bytes)
    except Exception:
        pass
    # ~32 MiB per-step working set on 128 MiB parts, ~16 MiB on 64 MiB parts.
    budget = max(8 << 20, min(32 << 20, cap // 4))
    return budget, cap


def _pick_tile_rows(W, C, itemsize, budget):
    """Largest multiple-of-8 row tile whose per-step working set fits budget.

    Model: double-buffered DMA streams (mid in + out, TH rows each, plus two
    8-row halo blocks) + ~8 live f32 (TH+16)-row temporaries (margin included
    for Mosaic's own intermediate buffers)."""
    per_row = C * W * (4 * itemsize + 8 * 4)
    fixed = C * W * (4 * itemsize * 2 * HALO + 8 * 4 * 2 * HALO)
    th = (budget - fixed) // max(per_row, 1)
    return max(HALO, int(th // 8) * 8)


def _run_filter(img, *, subtract, normalize):
    N, C, H, W = img.shape
    esz = img.dtype.itemsize

    budget, vmem_cap = _vmem_info()
    W_pad = _round_up(W, 128)                 # lane-dense (unmasked) stores
    th_cap = _pick_tile_rows(W_pad, C, esz, budget)

    n_t = pl.cdiv(_round_up(H, 8), th_cap)
    if N == 1 and H >= 2 * HALO:
        n_t = max(n_t, 2)                     # keep both v7x TensorCores busy
    TH = _round_up(pl.cdiv(H, n_t), 8)        # TH <= th_cap by construction
    H_pad = n_t * TH

    if (H_pad, W_pad) != (H, W):
        img_in = jnp.pad(img, ((0, 0), (0, 0), (0, H_pad - H), (0, W_pad - W)))
    else:
        img_in = img

    rb = TH // HALO                           # halo row-blocks per tile
    n_rb = H_pad // HALO

    def mid_map(n, t):
        return (n, 0, t, 0)

    def top_map(n, t):
        return (n, 0, jnp.maximum(t * rb - 1, 0), 0)

    def bot_map(n, t):
        return (n, 0, jnp.minimum((t + 1) * rb, n_rb - 1), 0)

    mid_spec = pl.BlockSpec((None, C, TH, W_pad), mid_map)
    has_halo = n_t > 1
    if has_halo:
        in_specs = [pl.BlockSpec((None, C, HALO, W_pad), top_map),
                    mid_spec,
                    pl.BlockSpec((None, C, HALO, W_pad), bot_map)]
        args = (img_in, img_in, img_in)
    else:
        in_specs = [mid_spec]
        args = (img_in,)

    # VMEM accounting: double-buffered streams + f32 temporaries (w/ margin).
    ws = (2 * C * W_pad * esz * (2 * TH + 4 * HALO)
          + 8 * C * (TH + 2 * HALO) * W_pad * 4)
    vmem_limit = int(min(max(ws + (8 << 20), 32 << 20), int(vmem_cap * 0.75)))

    kernel = functools.partial(_filter_kernel, subtract=subtract,
                               normalize=normalize, has_halo=has_halo)
    out = pl.pallas_call(
        kernel,
        out_shape=jax.ShapeDtypeStruct((N, C, H_pad, W_pad), img.dtype),
        grid_spec=pltpu.PrefetchScalarGridSpec(
            num_scalar_prefetch=0,
            grid=(N, n_t),
            in_specs=in_specs,
            out_specs=mid_spec,
        ),
        compiler_params=pltpu.CompilerParams(
            dimension_semantics=("parallel", "parallel"),
            vmem_limit_bytes=vmem_limit,
        ),
    )(*args)

    if (H_pad, W_pad) != (H, W):
        out = out[:, :, :H, :W]
    return out


def filter_high(img, *, recursions=1, normalize=False):
    """FilterHigh.forward: optional pre-blurs, then img - gaussian_blur(img)."""
    # TODO(synk): for recursions > 1 the pre-blur passes are separate
    # pallas_calls; fusing them would need a 2*(recursions-1)-row wider halo.
    for _ in range(max(recursions - 1, 0)):
        img = _run_filter(img, subtract=False, normalize=False)
    return _run_filter(img, subtract=True, normalize=normalize)


def _reference(img, *, normalize=False):
    """Pure-JAX reference using the torch-style 2-D Gaussian kernel."""
    k = KSIZE
    mean = (k - 1) / 2.0
    var = (k / 6.0) ** 2.0
    coord = jnp.arange(k, dtype=jnp.float32)
    xg = jnp.tile(coord, (k,)).reshape(k, k)
    yg = xg.T
    g = jnp.exp(-((xg - mean) ** 2 + (yg - mean) ** 2) / (2.0 * var))
    g = g / jnp.sum(g)
    C = img.shape[1]
    w = jnp.broadcast_to(g[None, None], (C, 1, k, k)).astype(jnp.float32)
    blur = jax.lax.conv_general_dilated(
        img.astype(jnp.float32), w, window_strides=(1, 1),
        padding=((PAD, PAD), (PAD, PAD)), feature_group_count=C,
        dimension_numbers=("NCHW", "OIHW", "NCHW"))
    res = img - blur
    return 0.5 + 0.5 * res if normalize else res


if __name__ == "__main__":
    key = jax.random.PRNGKey(0)
    k1, k2 = jax.random.split(key)

    # GaussianFilter is a depthwise conv with groups=3 -> channels must be 3.
    x1 = jax.random.uniform(k1, (2, 3, 16, 16), dtype=jnp.float32)
    out1 = jax.block_until_ready(filter_high(x1))
    ref1 = jax.block_until_ready(_reference(x1))
    assert out1.shape == ref1.shape == (2, 3, 16, 16)
    assert jnp.max(jnp.abs(out1 - ref1)) < 1e-5

    # Odd spatial shape + N == 1: exercises the multi-tile halo path, the
    # lane-dense W padding (50 -> 128) and the row padding / slicing.
    x2 = jax.random.uniform(k2, (1, 3, 37, 50), dtype=jnp.float32)
    out2 = jax.block_until_ready(filter_high(x2))
    ref2 = jax.block_until_ready(_reference(x2))
    assert out2.shape == ref2.shape == (1, 3, 37, 50)
    assert jnp.max(jnp.abs(out2 - ref2)) < 1e-5

    print("KERNEL_OK")
</pallas_src>

<mosaic_0001>
module attributes {stable_mosaic.version = 11 : i64} {
  func.func @_filter_kernel(%arg0: i32, %arg1: i32, %arg2: memref<1x3x16x128xf32, #tpu.memory_space<vmem>>, %arg3: memref<1x3x16x128xf32, #tpu.memory_space<vmem>>) attributes {dimension_semantics = [#tpu.dimension_semantics<parallel>, #tpu.dimension_semantics<parallel>], iteration_bounds = array<i64: 2, 1>, scalar_prefetch = 0 : i64, scratch_operands = 0 : i64, tpu.core_type = #tpu.core_type<tc>, window_params = [{transform_indices = @transform_0, window_bounds = array<i64: 1, 3, 16, 128>}, {transform_indices = @transform_1, window_bounds = array<i64: 1, 3, 16, 128>}]} {
    %c0 = arith.constant 0 : index
    %c0_0 = arith.constant 0 : index
    %c0_1 = arith.constant 0 : index
    %c0_2 = arith.constant 0 : index
    %0 = vector.load %arg2[%c0, %c0_0, %c0_1, %c0_2] : memref<1x3x16x128xf32, #tpu.memory_space<vmem>>, vector<1x3x16x128xf32>
    %1 = vector.shape_cast %0 : vector<1x3x16x128xf32> to vector<3x16x128xf32>
    %cst = arith.constant 0.000000e+00 : f32
    %2 = vector.broadcast %cst : f32 to vector<3x8x128xf32>
    %cst_3 = arith.constant 0.000000e+00 : f32
    %3 = vector.broadcast %cst_3 : f32 to vector<3x8x128xf32>
    %4 = tpu.concatenate %2, %1, %3 in 1 : vector<3x8x128xf32>, vector<3x16x128xf32>, vector<3x8x128xf32> -> vector<3x32x128xf32>
    %c1_i32 = arith.constant 1 : i32
    %5 = tpu.dynamic_rotate %4 by %c1_i32 dim 1 : vector<3x32x128xf32>, i32 -> vector<3x32x128xf32>
    %6 = vector.extract_strided_slice %5 {offsets = [0, 8, 0], sizes = [3, 16, 128], strides = [1, 1, 1]} : vector<3x32x128xf32> to vector<3x16x128xf32>
    %c31_i32 = arith.constant 31 : i32
    %7 = tpu.dynamic_rotate %4 by %c31_i32 dim 1 : vector<3x32x128xf32>, i32 -> vector<3x32x128xf32>
    %8 = vector.extract_strided_slice %7 {offsets = [0, 8, 0], sizes = [3, 16, 128], strides = [1, 1, 1]} : vector<3x32x128xf32> to vector<3x16x128xf32>
    %9 = arith.addf %6, %8 : vector<3x16x128xf32>
    %c2_i32 = arith.constant 2 : i32
    %10 = tpu.dynamic_rotate %4 by %c2_i32 dim 1 : vector<3x32x128xf32>, i32 -> vector<3x32x128xf32>
    %11 = vector.extract_strided_slice %10 {offsets = [0, 8, 0], sizes = [3, 16, 128], strides = [1, 1, 1]} : vector<3x32x128xf32> to vector<3x16x128xf32>
    %c30_i32 = arith.constant 30 : i32
    %12 = tpu.dynamic_rotate %4 by %c30_i32 dim 1 : vector<3x32x128xf32>, i32 -> vector<3x32x128xf32>
    %13 = vector.extract_strided_slice %12 {offsets = [0, 8, 0], sizes = [3, 16, 128], strides = [1, 1, 1]} : vector<3x32x128xf32> to vector<3x16x128xf32>
    %14 = arith.addf %11, %13 : vector<3x16x128xf32>
    %cst_4 = arith.constant 0.479438305 : f32
    %15 = vector.broadcast %cst_4 : f32 to vector<3x16x128xf32>
    %16 = arith.mulf %15, %1 : vector<3x16x128xf32>
    %cst_5 = arith.constant 0.233367682 : f32
    %17 = vector.broadcast %cst_5 : f32 to vector<3x16x128xf32>
    %18 = arith.mulf %17, %9 : vector<3x16x128xf32>
    %19 = arith.addf %16, %18 : vector<3x16x128xf32>
    %cst_6 = arith.constant 0.0269131567 : f32
    %20 = vector.broadcast %cst_6 : f32 to vector<3x16x128xf32>
    %21 = arith.mulf %20, %14 : vector<3x16x128xf32>
    %22 = arith.addf %19, %21 : vector<3x16x128xf32>
    %c1_i32_7 = arith.constant 1 : i32
    %23 = tpu.dynamic_rotate %22 by %c1_i32_7 dim 2 : vector<3x16x128xf32>, i32 -> vector<3x16x128xf32>
    %24 = tpu.iota {dimensions = array<i32: 2>} : vector<1x1x128xi32>
    %c1_i32_8 = arith.constant 1 : i32
    %25 = vector.broadcast %c1_i32_8 : i32 to vector<1x1x128xi32>
    %26 = arith.cmpi sge, %24, %25 : vector<1x1x128xi32>
    %27 = arith.extui %26 : vector<1x1x128xi1> to vector<1x1x128xi32>
    %28 = arith.sitofp %27 : vector<1x1x128xi32> to vector<1x1x128xf32>
    %29 = vector.broadcast %28 : vector<1x1x128xf32> to vector<3x16x128xf32>
    %30 = arith.mulf %23, %29 : vector<3x16x128xf32>
    %c127_i32 = arith.constant 127 : i32
    %31 = tpu.dynamic_rotate %22 by %c127_i32 dim 2 : vector<3x16x128xf32>, i32 -> vector<3x16x128xf32>
    %32 = tpu.iota {dimensions = array<i32: 2>} : vector<1x1x128xi32>
    %c127_i32_9 = arith.constant 127 : i32
    %33 = vector.broadcast %c127_i32_9 : i32 to vector<1x1x128xi32>
    %34 = arith.cmpi slt, %32, %33 : vector<1x1x128xi32>
    %35 = arith.extui %34 : vector<1x1x128xi1> to vector<1x1x128xi32>
    %36 = arith.sitofp %35 : vector<1x1x128xi32> to vector<1x1x128xf32>
    %37 = vector.broadcast %36 : vector<1x1x128xf32> to vector<3x16x128xf32>
    %38 = arith.mulf %31, %37 : vector<3x16x128xf32>
    %39 = arith.addf %30, %38 : vector<3x16x128xf32>
    %c2_i32_10 = arith.constant 2 : i32
    %40 = tpu.dynamic_rotate %22 by %c2_i32_10 dim 2 : vector<3x16x128xf32>, i32 -> vector<3x16x128xf32>
    %41 = tpu.iota {dimensions = array<i32: 2>} : vector<1x1x128xi32>
    %c2_i32_11 = arith.constant 2 : i32
    %42 = vector.broadcast %c2_i32_11 : i32 to vector<1x1x128xi32>
    %43 = arith.cmpi sge, %41, %42 : vector<1x1x128xi32>
    %44 = arith.extui %43 : vector<1x1x128xi1> to vector<1x1x128xi32>
    %45 = arith.sitofp %44 : vector<1x1x128xi32> to vector<1x1x128xf32>
    %46 = vector.broadcast %45 : vector<1x1x128xf32> to vector<3x16x128xf32>
    %47 = arith.mulf %40, %46 : vector<3x16x128xf32>
    %c126_i32 = arith.constant 126 : i32
    %48 = tpu.dynamic_rotate %22 by %c126_i32 dim 2 : vector<3x16x128xf32>, i32 -> vector<3x16x128xf32>
    %49 = tpu.iota {dimensions = array<i32: 2>} : vector<1x1x128xi32>
    %c126_i32_12 = arith.constant 126 : i32
    %50 = vector.broadcast %c126_i32_12 : i32 to vector<1x1x128xi32>
    %51 = arith.cmpi slt, %49, %50 : vector<1x1x128xi32>
    %52 = arith.extui %51 : vector<1x1x128xi1> to vector<1x1x128xi32>
    %53 = arith.sitofp %52 : vector<1x1x128xi32> to vector<1x1x128xf32>
    %54 = vector.broadcast %53 : vector<1x1x128xf32> to vector<3x16x128xf32>
    %55 = arith.mulf %48, %54 : vector<3x16x128xf32>
    %56 = arith.addf %47, %55 : vector<3x16x128xf32>
    %cst_13 = arith.constant 0.479438305 : f32
    %57 = vector.broadcast %cst_13 : f32 to vector<3x16x128xf32>
    %58 = arith.mulf %57, %22 : vector<3x16x128xf32>
    %59 = arith.subf %1, %58 : vector<3x16x128xf32>
    %cst_14 = arith.constant 0.233367682 : f32
    %60 = vector.broadcast %cst_14 : f32 to vector<3x16x128xf32>
    %61 = arith.mulf %60, %39 : vector<3x16x128xf32>
    %62 = arith.subf %59, %61 : vector<3x16x128xf32>
    %cst_15 = arith.constant 0.0269131567 : f32
    %63 = vector.broadcast %cst_15 : f32 to vector<3x16x128xf32>
    %64 = arith.mulf %63, %56 : vector<3x16x128xf32>
    %65 = arith.subf %62, %64 : vector<3x16x128xf32>
    %c0_16 = arith.constant 0 : index
    %c0_17 = arith.constant 0 : index
    %c0_18 = arith.constant 0 : index
    %c0_19 = arith.constant 0 : index
    %66 = vector.load %arg3[%c0_16, %c0_17, %c0_18, %c0_19] : memref<1x3x16x128xf32, #tpu.memory_space<vmem>>, vector<1x3x16x128xf32>
    %67 = vector.shape_cast %66 : vector<1x3x16x128xf32> to vector<3x16x128xf32>
    %68 = vector.shape_cast %65 : vector<3x16x128xf32> to vector<1x3x16x128xf32>
    tpu.vector_store %arg3[%c0_16, %c0_17, %c0_18, %c0_19], %68 {strides = array<i32>} : memref<1x3x16x128xf32, #tpu.memory_space<vmem>>, vector<1x3x16x128xf32>,
    return
  }
  func.func @transform_0(%arg0: i32, %arg1: i32) -> (i32, i32, i32, i32) {
    %c0_i32 = arith.constant 0 : i32
    %c0_i32_0 = arith.constant 0 : i32
    %c0_i32_1 = arith.constant 0 : i32
    return %arg0, %c0_i32, %arg1, %c0_i32_0 : i32, i32, i32, i32
  }
  func.func @transform_1(%arg0: i32, %arg1: i32) -> (i32, i32, i32, i32) {
    %c0_i32 = arith.constant 0 : i32
    %c0_i32_0 = arith.constant 0 : i32
    %c0_i32_1 = arith.constant 0 : i32
    return %arg0, %c0_i32, %arg1, %c0_i32_0 : i32, i32, i32, i32
  }
}

</mosaic_0001>

<bundles_post_ra>
// kernel: tpu_custom_call.1
= control target key start
LH: loop header
LB: loop body
LE: loop exit
PB: predicated region body
PF: predicated region fallthrough
CT: control target
= control target key end

     0   :  { %6 = vsyncpa [#allocation3], 0  ;;  %s1067_s0 = inlined_call_operand.hbm [shape: f32[2,3,16,128], index: 0, kind: input, shape index: {}]   ;;  %s1068_s1 = inlined_call_operand.hbm [shape: f32[2,3,16,128], index: 1, kind: output, shape index: {}]  }
   0x1   :  { %8 = vsyncpa [#allocation3 + $0x1], 0 }
   0x2   :  { %9 = vsyncpa [#allocation4], 0 }
   0x3   :  { %11 = vsyncpa [#allocation4 + $0x1], 0  ;;  %s723_s6 = smov 0   ;;  %s725_s7 = smov 0  }
   0x4   :  { %s727_s8 = smov 0   ;;  %s729_s9 = smov 0  }
   0x5   :  { %s731_s10 = smov 0   ;;  %s733_s11 = smov 0  }
   0x6 LB: > { %s500_s12 = sadd.s32 4294967295, %s700_s11   ;;  %s501_s13 = sadd.s32 4294967294, %s700_s11   ;;  %s700_s11 = sphi %s733_s11, %s17_s11   ;;  %s696_s10 = sphi %s731_s10, %s1083_s10   ;;  %s692_s9 = sphi %s729_s9, %s1082_s9   ;;  %s688_s8 = sphi %s727_s8, %s1081_s8   ;;  %s684_s7 = sphi %s725_s7, %s1080_s7   ;;  %s680_s6 = sphi %s723_s6, %s1079_s6  }
   0x7   : > { %s29_s14 = sadd.s32 1, %s696_s10  ;;  %s38_s15 = sadd.s32 1, %s688_s8 }
   0x8   : > { %p31_p0 = scmp.ge.s32.totalorder %s29_s14, 2  ;;  %p45_p1 = scmp.ne.s32.totalorder %s688_s8, %s684_s7 }
   0x9   : > { %p46_p2 = scmp.eq.s32.totalorder %s700_s11, 0  ;;  %p51_p3 = scmp.ne.s32.totalorder %s684_s7, %s680_s6 }
   0xa   : > { %s1085_s14 = smov (%p31_p0, %s29_s14), 0  ;;  %p52_p5 = scmp.eq.s32.totalorder %s500_s12, 0 }
   0xb   : > { %p764_p4 = por %p46_p2, %p45_p1  ;;  %s33_s17 = ssub.s32 %s696_s10, %s1085_s14 }
   0xc   : > { %p77_p6 = scmp.eq.s32.totalorder %s500_s12, 1  ;;  %p36_p7 = scmp.eq.s32.totalorder %s33_s17, 0 }
   0xd   : > { %p770_p8 = por %p52_p5, %p51_p3  ;;  %p83_p10 = scmp.eq.s32.totalorder %s501_s13, 1 }
   0xe   : > { %p774_p9 = por %p77_p6, %p45_p1  ;;  %p529_p13 = scmp.lt.s32.totalorder %s700_s11, 2 }
   0xf   : > { %s779_s20 = scalar_select %p36_p7, %s688_s8, %s38_s15  }
  0x10   : > { %s1072_s19 = scalar_select %p774_p9, 1, 0 }
  0x11   : > { %p781_p11 = por %p83_p10, %p51_p3  ;;  %s103_s22 = sand.u32 1, %s688_s8  }
  0x12   : > { %s513_s23 = smul.u32 48, %s103_s22  ;;  %p791_p0 = pnand %p529_p13, %p764_p4 }
  0x13   : > { %s1073_s21 = scalar_select %p781_p11, 1, 0 }
  0x14   : > { %s514_s24 = smul.u32 768, %s696_s10  ;;  %s107_s29 = scalar_lea.vmem [#allocation2], %s513_s23 }
  0x15   : > { %s116_s30 = sshll.u32 %s107_s29, 4  ;;  %s803_s2 = scalar_lea.sflag [#allocation3], %s103_s22  ;;  %s800_s30 = int_to_ptr.vmem [resolvable:$true] %s116_s30 }
  0x16   : > { %s798_s28 = scalar_lea.hbm %s1067_s0, %s514_s24  ;;  %p590_p3 = pneg %p791_p0 }
  0x17   : > { %s588_s3 = scalar_lea.hbm %s798_s28, 768  ;;  %s593_s12 = scalar_lea.hbm %s1067_s0, 1536 }
  0x18   : > { %p589_p2 = scmp.ne.s32.totalorder %s798_s28, %s588_s3  ;;  %p594_p6 = scmp.lt.u32.totalorder %s798_s28, %s1067_s0 }
  0x19   : > { %p595_p7 = scmp.lt.u32.totalorder %s593_s12, %s588_s3  ;;  %p597_p13 = scmp.lt.u32.totalorder %s588_s3, %s798_s28 }
  0x1a   : > { %p591_p4 = pnand %p590_p3, %p589_p2 }
  0x1b   : > { %p596_p10 = por %p595_p7, %p594_p6 }
  0x1c   : > { %p592_p5 = pneg %p591_p4 }
  0x1d   : > { %p598_p12 = por %p597_p13, %p596_p10 }
  0x1f   : > { %p599_p1 = pnand %p598_p12, %p592_p5 }
  0x21   : > { %602 = shalt.err (!%p599_p1)
}
  0x22   : > { %s603_s16 = scalar_lea.vmem %s800_s30, 768  ;;  %s702_s17 = smov [#allocation2]  }
  0x23   : > { %p604_p2 = scmp.ne.s32.totalorder %s800_s30, %s603_s16  ;;  %s608_s22 = sshll.u32 %s702_s17, 4  ;;  %s609_s22 = int_to_ptr.vmem [resolvable:$false] %s608_s22 }
  0x24   : > { %s610_s23 = scalar_lea.vmem %s609_s22, 1536  ;;  %p611_p9 = scmp.lt.s32.totalorder %s800_s30, %s609_s22 }
  0x25   : > { %p606_p4 = pnand %p604_p2, %p590_p3  ;;  %p612_p6 = scmp.lt.s32.totalorder %s610_s23, %s603_s16 }
  0x27   : > { %p607_p11 = pneg %p606_p4  ;;  %p613_p7 = por %p612_p6, %p611_p9 }
  0x29   : > { %p614_p10 = pnand %p613_p7, %p607_p11 }
  0x2b   : > { %617 = shalt.err (!%p614_p10)
}
  0x2c   : > { %s703_s24 = smov 128   ;;  %s704_s26 = smov 8  }
  0x2d   : > { %524 = dma.hbm_to_vmem [thread:$0]  (!%p791_p0), %s798_s28, 768, %s800_s30, %s803_s2, %s703_s24, %s703_s24, %s704_s26  }
  0x2e   : > { %p124_p12 = scmp.lt.s32.totalorder %s700_s11, 3  ;;  %p1075_p1 = scmp.ge.s32.totalorder %s700_s11, 1 }
  0x30   : > { %p125_p3 = pnand %p1075_p1, %p124_p12 }
  0x31   : > { %s835_s27 = sand.u32 (!%p125_p3), 1, %s684_s7  }
  0x32   : > { %128 = sbr.rel (%p125_p3) target bundleno = 263 (0x107), region = 24  ;;  %s131_s3 = scalar_lea.sflag (!%p125_p3), [#allocation3], %s835_s27 }
  0x33   : > { %s515_s29 = smul.u32 (!%p125_p3), 48, %s835_s27 }
  0x35   : > { %s841_s4 = scalar_lea.vmem (!%p125_p3), [#allocation2], %s515_s29 }
  0x39   : > { %671 = dma.done.wait (%p770_p8), %s131_s3, 768  }
  0x3a   : > { %673 = vsyncadd (%p770_p8), %s131_s3, 4294966528  ;;  %v167_v0 = vlaneseq  ;;  %v852_v2 = vld [vmem:[%s841_s4 + $0x10] sm:$0xff]  ;;  %v855_v3 = vld [vmem:[%s841_s4 + $0x18] sm:$0xff]  ;;  %s705_s18 = smov 1   ;;  %s706_s25 = smov 127  }
  0x3b   : > { %v861_v4 = vld [vmem:[%s841_s4] sm:$0xff]  ;;  %v162_v5 = vrot.slane %v852_v2, 7  ;;  %v177_v6 = vrot.slane %v852_v2, 1  ;;  %v180_v7 = vrot.slane %v855_v3, 1  ;;  %v196_v8 = vrot.slane %v852_v2, 6  ;;  %v868_v9 = vld [vmem:[%s841_s4 + $0x8] sm:$0xff] }
  0x3c   : > { %v848_v1 = vshrl.u32 %v167_v0, 7  ;;  %v209_v10 = vrot.slane %v852_v2, 2  ;;  %v212_v11 = vrot.slane %v855_v3, 2  ;;  %v229_v12 = vmul.f32 0.4794383, %v852_v2  ;;  %v913_v50 = vld [vmem:[%s841_s4 + $0x20] sm:$0xff] }
  0x3d   : > { %v161_v13 = vrot.slane %v861_v4, 7  ;;  %v176_v17 = vrot.slane %v861_v4, 1  ;;  %v179_v21 = vrot.slane %v868_v9, 1  ;;  %v195_v23 = vrot.slane %v861_v4, 6  ;;  %v916_v51 = vld [vmem:[%s841_s4 + $0x28] sm:$0xff]  ;;  %s707_s28 = smov 2  }
  0x3e   : > { %vm169_vm0 = vcmp.lt.s32.totalorder %v848_v1, 1  ;;  %vm182_vm1 = vcmp.lt.s32.totalorder %v848_v1, 7  ;;  %vm201_vm2 = vcmp.lt.s32.totalorder %v848_v1, 2  ;;  %vm214_vm3 = vcmp.lt.s32.totalorder %v848_v1, 6  ;;  %s708_s30 = smov 126   ;;  %s152_s2 = scalar_lea.vmem [#allocation5], %s515_s29 }
  0x3f   : > { %v174_v14 = vsel %vm169_vm0, 0.0, %v162_v5  ;;  %v187_v15 = vsel %vm182_vm1, %v177_v6, %v180_v7  ;;  %v206_v16 = vsel %vm201_vm2, 0.0, %v196_v8  ;;  %v219_v19 = vsel %vm214_vm3, %v209_v10, %v212_v11  ;;  %s413_s5 = sshll.u32 %s152_s2, 4  ;;  %s516_s12 = smul.u32 768, %s692_s9  ;;  %s1013_s5 = int_to_ptr.vmem [resolvable:$true] %s413_s5 }
  0x40   : > { %v191_v18 = vadd.f32 %v187_v15, %v174_v14  ;;  %v173_v20 = vsel %vm169_vm0, 0.0, %v161_v13  ;;  %v223_v22 = vadd.f32 %v219_v19, %v206_v16  ;;  %v208_v24 = vrot.slane %v861_v4, 2  ;;  %s398_s17 = scalar_lea.sflag [#allocation4], %s835_s27  ;;  %s618_s9 = scalar_lea.vmem %s1013_s5, 768 }
  0x41   : > { %v211_v25 = vrot.slane %v868_v9, 2  ;;  %v186_v27 = vsel %vm182_vm1, %v176_v17, %v179_v21  ;;  %v227_v28 = vmul.f32 0.4794383, %v861_v4  ;;  %v165_v29 = vrot.slane %v855_v3, 7  ;;  %s1018_s16 = scalar_lea.hbm %s1068_s1, %s516_s12  ;;  %p619_p8 = scmp.ne.s32.totalorder %s1013_s5, %s618_s9 }
  0x42   : > { %v235_v26 = vmul.f32 0.23336768, %v191_v18  ;;  %v247_v30 = vmul.f32 0.026913157, %v223_v22  ;;  %v189_v31 = vadd.f32 %v186_v27, %v173_v20  ;;  %v205_v32 = vsel %vm201_vm2, 0.0, %v195_v23  ;;  %p1076_p9 = scmp.ne.s32.totalorder %s1072_s19, 0 }
  0x43   : > { %v218_v33 = vsel %vm214_vm3, %v208_v24, %v211_v25  ;;  %v171_v36 = vsel %vm169_vm0, %v162_v5, %v165_v29  ;;  %v184_v37 = vsel %vm182_vm1, %v180_v7, 0.0  ;;  %v199_v40 = vrot.slane %v855_v3, 6  ;;  %s710_s22 = smov [#allocation5]  }
  0x44   : > { %v241_v34 = vadd.f32 %v235_v26, %v229_v12  ;;  %v221_v35 = vadd.f32 %v218_v33, %v205_v32  ;;  %v233_v38 = vmul.f32 0.23336768, %v189_v31  ;;  %v192_v39 = vadd.f32 %v184_v37, %v171_v36  ;;  %p620_p11 = pnand %p619_p8, %p1076_p9  ;;  %s622_s23 = sshll.u32 %s710_s22, 4  ;;  %s623_s23 = int_to_ptr.vmem [resolvable:$false] %s622_s23 }
  0x45   : > { %v216_v41 = vsel %vm214_vm3, %v212_v11, 0.0  ;;  %v230_v44 = vmul.f32 0.4794383, %v855_v3  ;;  %v164_v45 = vrot.slane %v868_v9, 7  ;;  %v203_v47 = vsel %vm201_vm2, %v196_v8, %v199_v40  ;;  %s624_s24 = scalar_lea.vmem %s623_s23, 1536  ;;  %p625_p5 = scmp.lt.s32.totalorder %s1013_s5, %s623_s23 }
  0x46   : > { %v904_v42 = vadd.f32 %v247_v30, %v241_v34  ;;  %v245_v43 = vmul.f32 0.026913157, %v221_v35  ;;  %v239_v46 = vadd.f32 %v233_v38, %v227_v28  ;;  %v236_v48 = vmul.f32 0.23336768, %v192_v39  ;;  %p621_p0 = pneg %p620_p11  ;;  %p626_p13 = scmp.lt.s32.totalorder %s624_s24, %s618_s9 }
  0x47   : > { %v183_v49 = vsel %vm182_vm1, %v179_v21, 0.0  ;;  %v224_v52 = vadd.f32 %v216_v41, %v203_v47  ;;  %v170_v53 = vsel %vm169_vm0, %v161_v13, %v164_v45  ;;  %v198_v54 = vrot.slane %v868_v9, 6 }
  0x48   : > { %261 = vrot.lane.b32.xlu1 %v904_v42, %s705_s18  ;;  %v215_v55 = vsel %vm214_vm3, %v211_v25, 0.0  ;;  %v925_v56 = vadd.f32 %v245_v43, %v239_v46  ;;  %v242_v57 = vadd.f32 %v236_v48, %v230_v44  ;;  %v190_v58 = vadd.f32 %v183_v49, %v170_v53  ;;  %p627_p2 = por %p626_p13, %p625_p5 }
  0x49   : > { %v228_v59 = vmul.f32 0.4794383, %v868_v9  ;;  %v248_v60 = vmul.f32 0.026913157, %v224_v52  ;;  %v202_v61 = vsel %vm201_vm2, %v195_v23, %v198_v54  ;;  %v163_v62 = vrot.slane %v913_v50, 7 }
  0x4a   : > { %v166_v63 = vrot.slane %v916_v51, 7  ;;  %257 = vrot.lane.b32.xlu0 %v925_v56, %s705_s18  ;;  %v222_v5 = vadd.f32 %v215_v55, %v202_v61  ;;  %v234_v6 = vmul.f32 0.23336768, %v190_v58  ;;  %v181_v7 = vrot.slane %v916_v51, 1  ;;  %p628_p4 = pnand %p627_p2, %p621_p0 }
  0x4b   : > { %v197_v8 = vrot.slane %v913_v50, 6  ;;  %v254_v10 = vadd.f32 %v248_v60, %v242_v57  ;;  %v200_v12 = vrot.slane %v916_v51, 6  ;;  %v213_v13 = vrot.slane %v916_v51, 2 }
  0x4c   : > { %v172_v11 = vsel %vm169_vm0, %v163_v62, %v166_v63  ;;  %v240_v14 = vadd.f32 %v234_v6, %v228_v59  ;;  %v246_v15 = vmul.f32 0.026913157, %v222_v5  ;;  %v185_v16 = vsel %vm182_vm1, %v181_v7, 0.0 }
  0x4d   : > { %263 = vrot.lane.b32.xlu1 %v254_v10, %s705_s18  ;;  %v194_v17 = vadd.f32 %v185_v16, %v172_v11  ;;  %v204_v18 = vsel %vm201_vm2, %v197_v8, %v200_v12  ;;  %v217_v19 = vsel %vm214_vm3, %v213_v13, 0.0  ;;  %v232_v20 = vmul.f32 0.4794383, %v916_v51 }
  0x4e   : > { %v252_v21 = vadd.f32 %v246_v15, %v240_v14  ;;  %v226_v22 = vadd.f32 %v217_v19, %v204_v18  ;;  %v175_v23 = vsel %vm169_vm0, 0.0, %v163_v62  ;;  %v178_v24 = vrot.slane %v913_v50, 1 }
  0x4f   : > { %v238_v25 = vmul.f32 0.23336768, %v194_v17  ;;  %v207_v26 = vsel %vm201_vm2, 0.0, %v197_v8  ;;  %v210_v27 = vrot.slane %v913_v50, 2  ;;  %v231_v34 = vmul.f32 0.4794383, %v913_v50 }
  0x50   : > { %259 = vrot.lane.b32.xlu0 %v252_v21, %s705_s18  ;;  %v250_v28 = vmul.f32 0.026913157, %v226_v22  ;;  %v188_v29 = vsel %vm182_vm1, %v178_v24, %v181_v7  ;;  %v957_v30 = vmul.f32 0.4794383, %v252_v21  ;;  %v965_v37 = vmul.f32 0.4794383, %v925_v56 }
  0x51   : > { %v244_v31 = vadd.f32 %v238_v25, %v232_v20  ;;  %v193_v32 = vadd.f32 %v188_v29, %v175_v23  ;;  %v220_v33 = vsel %vm214_vm3, %v210_v27, %v213_v13  ;;  %v970_v1 = vmul.f32 0.4794383, %v254_v10 }
  0x52   : > { %v225_v35 = vadd.f32 %v220_v33, %v207_v26  ;;  %v362_v36 = vsub.f32 %v868_v9, %v957_v30  ;;  %v361_v41 = vsub.f32 %v861_v4, %v965_v37  ;;  %v973_v44 = vmul.f32 0.4794383, %v904_v42 }
  0x53   : > { %v256_v38 = vadd.f32 %v250_v28, %v244_v31  ;;  %v237_v39 = vmul.f32 0.23336768, %v193_v32  ;;  %v364_v9 = vsub.f32 %v855_v3, %v970_v1  ;;  %v270_v57 = vand.u32 127, %v167_v0 }
  0x54   : > { %v249_v40 = vmul.f32 0.026913157, %v225_v35  ;;  %v363_v46 = vsub.f32 %v852_v2, %v973_v44  ;;  %v709_v60 = vmov 0.0  }
  0x55   : > { %267 = vrot.lane.b32.xlu1 %v256_v38, %s705_s18  ;;  %v243_v43 = vadd.f32 %v237_v39, %v231_v34  ;;  %v980_v47 = vmul.f32 0.4794383, %v256_v38  ;;  %vm292_vm4 = vcmp.lt.s32.totalorder %v270_v57, 127  ;;  %vm271_vm5 = vcmp.ge.s32.totalorder %v270_v57, 1 }
  0x56   : > { %v507_v61 = vsel %vm292_vm4, 1.0, %v709_v60  ;;  %v506_v62 = vsel %vm271_vm5, 1.0, %v709_v60  ;;  %vm319_vm6 = vcmp.ge.s32.totalorder %v270_v57, 2  ;;  %vm340_vm7 = vcmp.lt.s32.totalorder %v270_v57, 126 }
  0x57   : > { %v255_v45 = vadd.f32 %v249_v40, %v243_v43  ;;  %v366_v49 = vsub.f32 %v916_v51, %v980_v47  ;;  %v508_v43 = vsel %vm319_vm6, 1.0, %v709_v60  ;;  %v509_v1 = vsel %vm340_vm7, 1.0, %v709_v60 }
  0x59   : > { %265 = vrot.lane.b32.xlu0 %v255_v45, %s705_s18  ;;  %282 = vrot.lane.b32.xlu1 %v252_v21, %s706_s25  ;;  %v982_v48 = vmul.f32 0.4794383, %v255_v45 }
  0x5b   : > { %v365_v52 = vsub.f32 %v913_v50, %v982_v48 }
  0x5d   : > { %280 = vrot.lane.b32.xlu0 %v925_v56, %s706_s25  ;;  %286 = vrot.lane.b32.xlu1 %v254_v10, %s706_s25 }
  0x61   : > { %284 = vrot.lane.b32.xlu0 %v904_v42, %s706_s25  ;;  %290 = vrot.lane.b32.xlu1 %v256_v38, %s706_s25 }
  0x65   : > { %288 = vrot.lane.b32.xlu0 %v255_v45, %s706_s25  ;;  %309 = vrot.lane.b32.xlu1 %v252_v21, %s707_s28 }
  0x69   : > { %307 = vrot.lane.b32.xlu0 %v925_v56, %s707_s28  ;;  %313 = vrot.lane.b32.xlu1 %v254_v10, %s707_s28 }
  0x6d   : > { %311 = vrot.lane.b32.xlu0 %v904_v42, %s707_s28  ;;  %317 = vrot.lane.b32.xlu1 %v256_v38, %s707_s28 }
  0x71   : > { %315 = vrot.lane.b32.xlu0 %v255_v45, %s707_s28  ;;  %330 = vrot.lane.b32.xlu1 %v252_v21, %s708_s30 }
  0x75   : > { %328 = vrot.lane.b32.xlu0 %v925_v56, %s708_s30  ;;  %334 = vrot.lane.b32.xlu1 %v254_v10, %s708_s30 }
  0x79   : > { %332 = vrot.lane.b32.xlu0 %v904_v42, %s708_s30  ;;  %338 = vrot.lane.b32.xlu1 %v256_v38, %s708_s30 }
  0x7d   : > { %336 = vrot.lane.b32.xlu0 %v255_v45, %s708_s30 }
  0xba   : > { %v262_v53 = vpop.permute.xlu1 %261 }
  0xbb   : > { %v276_v17 = vmul.f32 %v506_v62, %v262_v53 }
  0xbc   : > { %v258_v54 = vpop.permute.xlu0 %257 }
  0xbd   : > { %v274_v42 = vmul.f32 %v506_v62, %v258_v54 }
  0xbf   : > { %v264_v55 = vpop.permute.xlu1 %263 }
  0xc0   : > { %v277_v11 = vmul.f32 %v506_v62, %v264_v55 }
  0xc2   : > { %v260_v58 = vpop.permute.xlu0 %259 }
  0xc3   : > { %v275_v56 = vmul.f32 %v506_v62, %v260_v58 }
  0xc7   : > { %v268_v59 = vpop.permute.xlu1 %267 }
  0xc8   : > { %v279_v18 = vmul.f32 %v506_v62, %v268_v59 }
  0xcb   : > { %v266_v63 = vpop.permute.xlu0 %265  ;;  %v283_v5 = vpop.permute.xlu1 %282 }
  0xcc   : > { %v296_v6 = vmul.f32 %v507_v61, %v283_v5  ;;  %v278_v31 = vmul.f32 %v506_v62, %v266_v63 }
  0xce   : > { %v302_v7 = vadd.f32 %v296_v6, %v275_v56 }
  0xcf   : > { %v281_v8 = vpop.permute.xlu0 %280  ;;  %v287_v10 = vpop.permute.xlu1 %286 }
  0xd0   : > { %v368_v12 = vmul.f32 0.23336768, %v302_v7  ;;  %v295_v13 = vmul.f32 %v507_v61, %v281_v8  ;;  %v298_v14 = vmul.f32 %v507_v61, %v287_v10 }
  0xd2   : > { %v374_v0 = vsub.f32 %v362_v36, %v368_v12  ;;  %v301_v15 = vadd.f32 %v295_v13, %v274_v42  ;;  %v304_v16 = vadd.f32 %v298_v14, %v277_v11 }
  0xd3   : > { %v285_v19 = vpop.permute.xlu0 %284  ;;  %v291_v20 = vpop.permute.xlu1 %290 }
  0xd4   : > { %v367_v21 = vmul.f32 0.23336768, %v301_v15  ;;  %v370_v22 = vmul.f32 0.23336768, %v304_v16  ;;  %v297_v23 = vmul.f32 %v507_v61, %v285_v19  ;;  %v300_v24 = vmul.f32 %v507_v61, %v291_v20 }
  0xd6   : > { %v373_v25 = vsub.f32 %v361_v41, %v367_v21  ;;  %v376_v26 = vsub.f32 %v364_v9, %v370_v22  ;;  %v303_v27 = vadd.f32 %v297_v23, %v276_v17  ;;  %v306_v28 = vadd.f32 %v300_v24, %v279_v18 }
  0xd7   : > { %v289_v29 = vpop.permute.xlu0 %288  ;;  %v310_v30 = vpop.permute.xlu1 %309 }
  0xd8   : > { %v369_v32 = vmul.f32 0.23336768, %v303_v27  ;;  %v372_v33 = vmul.f32 0.23336768, %v306_v28  ;;  %v299_v34 = vmul.f32 %v507_v61, %v289_v29  ;;  %v323_v45 = vmul.f32 %v508_v43, %v310_v30 }
  0xda   : > { %v375_v35 = vsub.f32 %v363_v46, %v369_v32  ;;  %v378_v4 = vsub.f32 %v366_v49, %v372_v33  ;;  %v305_v36 = vadd.f32 %v299_v34, %v278_v31 }
  0xdb   : > { %v308_v37 = vpop.permute.xlu0 %307  ;;  %v314_v3 = vpop.permute.xlu1 %313 }
  0xdc   : > { %v371_v38 = vmul.f32 0.23336768, %v305_v36  ;;  %v322_v46 = vmul.f32 %v508_v43, %v308_v37  ;;  %v325_v53 = vmul.f32 %v508_v43, %v314_v3 }
  0xde   : > { %v377_v39 = vsub.f32 %v365_v52, %v371_v38 }
  0xdf   : > { %v312_v40 = vpop.permute.xlu0 %311  ;;  %v318_v41 = vpop.permute.xlu1 %317 }
  0xe0   : > { %v324_v58 = vmul.f32 %v508_v43, %v312_v40  ;;  %v327_v59 = vmul.f32 %v508_v43, %v318_v41 }
  0xe3   : > { %v316_v2 = vpop.permute.xlu0 %315  ;;  %v331_v44 = vpop.permute.xlu1 %330 }
  0xe4   : > { %v344_v9 = vmul.f32 %v509_v1, %v331_v44  ;;  %v326_v11 = vmul.f32 %v508_v43, %v316_v2 }
  0xe6   : > { %v350_v51 = vadd.f32 %v344_v9, %v323_v45 }
  0xe7   : > { %v329_v47 = vpop.permute.xlu0 %328  ;;  %v335_v49 = vpop.permute.xlu1 %334 }
  0xe8   : > { %v380_v54 = vmul.f32 0.026913157, %v350_v51  ;;  %v343_v55 = vmul.f32 %v509_v1, %v329_v47  ;;  %v346_v50 = vmul.f32 %v509_v1, %v335_v49 }
  0xea   : > { %v386_v48 = vsub.f32 %v374_v0, %v380_v54  ;;  %v349_v52 = vadd.f32 %v343_v55, %v322_v46  ;;  %v352_v57 = vadd.f32 %v346_v50, %v325_v53 }
  0xeb   : > { %v333_v61 = vpop.permute.xlu0 %332  ;;  %v339_v60 = vpop.permute.xlu1 %338 }
  0xec   : > { %392 = vst [vmem:[%s152_s2 + $0x8] sm:$0xff] %v386_v48  ;;  %v379_v62 = vmul.f32 0.026913157, %v349_v52  ;;  %v382_v63 = vmul.f32 0.026913157, %v352_v57  ;;  %v345_v5 = vmul.f32 %v509_v1, %v333_v61  ;;  %v348_v56 = vmul.f32 %v509_v1, %v339_v60 }
  0xee   : > { %v385_v6 = vsub.f32 %v373_v25, %v379_v62  ;;  %v388_v7 = vsub.f32 %v376_v26, %v382_v63  ;;  %v351_v42 = vadd.f32 %v345_v5, %v324_v58  ;;  %v354_v8 = vadd.f32 %v348_v56, %v327_v59 }
  0xef   : > { %v337_v10 = vpop.permute.xlu0 %336 }
  0xf0   : > { %391 = vst [vmem:[%s152_s2] sm:$0xff] %v385_v6  ;;  %394 = vst [vmem:[%s152_s2 + $0x18] sm:$0xff] %v388_v7  ;;  %v381_v12 = vmul.f32 0.026913157, %v351_v42  ;;  %v384_v13 = vmul.f32 0.026913157, %v354_v8  ;;  %v347_v14 = vmul.f32 %v509_v1, %v337_v10 }
  0xf2   : > { %v387_v0 = vsub.f32 %v375_v35, %v381_v12  ;;  %v390_v15 = vsub.f32 %v378_v4, %v384_v13  ;;  %v353_v16 = vadd.f32 %v347_v14, %v326_v11 }
  0xf4   : > { %393 = vst [vmem:[%s152_s2 + $0x10] sm:$0xff] %v387_v0  ;;  %396 = vst [vmem:[%s152_s2 + $0x28] sm:$0xff] %v390_v15  ;;  %v383_v17 = vmul.f32 0.026913157, %v353_v16 }
  0xf6   : > { %v389_v18 = vsub.f32 %v377_v39, %v383_v17 }
  0xf8   : > { %395 = vst [vmem:[%s152_s2 + $0x20] sm:$0xff] %v389_v18 }
  0xf9   : > { %631 = shalt.err (!%p628_p4)
}
  0xfa   : > { %s632_s26 = scalar_lea.hbm %s1018_s16, 768  ;;  %s636_s4 = scalar_lea.hbm %s1068_s1, 1536 }
  0xfb   : > { %p633_p6 = scmp.ne.s32.totalorder %s1018_s16, %s632_s26  ;;  %p637_p12 = scmp.lt.u32.totalorder %s1018_s16, %s1068_s1 }
  0xfc   : > { %p638_p1 = scmp.lt.u32.totalorder %s636_s4, %s632_s26  ;;  %p640_p8 = scmp.lt.u32.totalorder %s632_s26, %s1018_s16 }
  0xfd   : > { %p634_p7 = pnand %p633_p6, %p1076_p9 }
  0xfe   : > { %p639_p3 = por %p638_p1, %p637_p12 }
  0xff   : > { %p635_p10 = pneg %p634_p7 }
 0x100   : > { %p641_p11 = por %p640_p8, %p639_p3 }
 0x102   : > { %p642_p0 = pnand %p641_p11, %p635_p10 }
 0x104   : > { %645 = shalt.err (!%p642_p0)
}
 0x105   : > { %s711_s28 = smov 128   ;;  %s712_s30 = smov 8  }
 0x106   : > { %519 = dma.vmem_to_hbm [thread:$0]  (%p1076_p9), %s1013_s5, 768, %s1018_s16, %s398_s17, %s711_s28, %s711_s28, %s712_s30  }
 0x107 PF: > { %s428_s2 = sand.u32 1, %s680_s6   ;;  %p1077_p5 = scmp.ne.s32.totalorder %s1073_s21, 0 }
 0x108   : > { %p1078_p13 = scmp.ge.s32.totalorder %s700_s11, 2  ;;  %s429_s12 = scalar_lea.sflag [#allocation4], %s428_s2 }
 0x10a   : > { %p526_p2 = pnand %p1078_p13, %p1077_p5 }
 0x10c   : > { %675 = dma.done.wait (!%p526_p2), %s429_s12, 768  }
 0x10d   : > { %677 = vsyncadd (!%p526_p2), %s429_s12, 4294966528  ;;  %s17_s11 = sadd.s32 1, %s700_s11   ;;  %s1079_s6 = smov %s684_s7 }
 0x10e   : > { %p14_p4 = scmp.ge.s32.totalorder %s17_s11, 4   ;;  %s1080_s7 = smov %s688_s8 }
 0x10f   : > { %s1081_s8 = smov %s779_s20  ;;  %s1082_s9 = smov %s696_s10 }
 0x110   : > { %s1083_s10 = smov %s1085_s14  ;;  %16 = sbr.rel (!%p14_p4) target bundleno = 6 (0x6), region = 69 }
 0x117   :  { %434 = vsyncpa [#allocation3], 1 }
 0x118   :  { %436 = vsyncpa [#allocation3 + $0x1], 1 }
 0x119   :  { %437 = vsyncpa [#allocation4], 1 }
 0x11a   :  { %439 = vsyncpa [#allocation4 + $0x1], 1 }

</bundles_post_ra>
